<compile_context>
chip_gen: v5e
topology: v5e:2x2
jax: 0.10.0
libtpu: 0.0.40
codegen_flags: <defaults>
</compile_context>

<pallas_src>
import jax
import jax.numpy as jnp
from jax import lax
from jax.experimental import pallas as pl
from jax.experimental.pallas import tpu as pltpu

_LANE = 128
_SUBLANE = 8


def _cdiv(a, b):
    return -(-a // b)


def _round_up(a, b):
    return _cdiv(a, b) * b


def _sample_loss_kernel(recon_ref, x_ref, mu_ref, logvar_ref, out_ref, acc_ref):
    p = pl.program_id(0)          # parallel half (2-way TC split on v7x)
    i = pl.program_id(1)          # reduction step within this half
    n = pl.num_programs(1)

    @pl.when(i == 0)
    def _init():
        acc_ref[...] = jnp.zeros_like(acc_ref)

    # Per-tile cast: bf16 inputs stay bf16 in HBM, compute in f32.
    recon = recon_ref[...].astype(jnp.float32)
    x = x_ref[...].astype(jnp.float32)

    # PyTorch nn.BCELoss clamps each log term at -100.  Padded elements were
    # set to recon = x = 1 in the wrapper, which contributes exactly 0 here,
    # so the steady state needs no mask at all.
    log_r = jnp.maximum(jnp.log(recon), -100.0)
    log_1mr = jnp.maximum(jnp.log(1.0 - recon), -100.0)
    # x*log_r + (1-x)*log_1mr  ==  log_1mr + x*(log_r - log_1mr)
    acc_ref[...] += log_1mr + x * (log_r - log_1mr)

    @pl.when(i == n - 1)
    def _finalize():
        mu = mu_ref[...].astype(jnp.float32)
        lv = logvar_ref[...].astype(jnp.float32)
        kld = -0.5 * jnp.sum(1.0 + lv - mu * mu - jnp.exp(lv))
        # Add the KLD term exactly once (in parallel-half 0 only).
        kld = kld * (p == 0).astype(jnp.float32)
        partial = kld - jnp.sum(acc_ref[...])     # BCE = -sum(acc)
        rr = lax.broadcasted_iota(jnp.int32, out_ref.shape, 0)
        cc = lax.broadcasted_iota(jnp.int32, out_ref.shape, 1)
        out_ref[...] = jnp.where((rr == 0) & (cc == 0), partial, 0.0)


def _choose_tiling(n_elems, n_parallel):
    # Lane (column) width: dense multiple of 128, capped at 2048.
    tile_c = min(2048, max(_LANE, _round_up(_cdiv(n_elems, _SUBLANE), _LANE)))
    rows_needed = _cdiv(n_elems, tile_c)
    # Sublane (row) tile: multiple of 8, up to 256 -> 256x2048 f32 = 2 MiB/step.
    tile_r = min(256, max(_SUBLANE, _round_up(rows_needed, _SUBLANE)))
    n_steps = _cdiv(rows_needed, n_parallel * tile_r)
    rows = n_parallel * n_steps * tile_r
    return tile_c, tile_r, n_steps, rows


def sample_loss(recon, x, mu, log_var):
    """VAE loss: BCE(sum) + KLD, as a dense, pipelined Pallas TPU reduction."""
    n_elems = recon.size
    n_parallel = 2                      # both TCs on v7x; no-op on v5e/v6e
    tile_c, tile_r, n_steps, rows = _choose_tiling(n_elems, n_parallel)
    n_pad = rows * tile_c

    # Flatten (no cast!) and pad with 1.0 so padded BCE contributions are 0.
    recon_flat = recon.reshape(-1)
    x_flat = x.reshape(-1)
    if n_pad != n_elems:
        pad = n_pad - n_elems
        recon_flat = jnp.pad(recon_flat, (0, pad), constant_values=1.0)
        x_flat = jnp.pad(x_flat, (0, pad), constant_values=1.0)
    recon2d = recon_flat.reshape(rows, tile_c)
    x2d = x_flat.reshape(rows, tile_c)

    mu2d = mu.reshape(mu.shape[0], -1)
    lv2d = log_var.reshape(log_var.shape[0], -1)

    in_bytes = recon2d.dtype.itemsize
    cost = pl.CostEstimate(
        flops=7 * n_pad + 5 * mu2d.size,
        transcendentals=2 * n_pad + mu2d.size,
        bytes_accessed=2 * n_pad * in_bytes
        + (mu2d.size + lv2d.size) * mu2d.dtype.itemsize
        + n_parallel * 8 * 128 * 4,
    )

    # VMEM budget: 2 streams x 2 pipeline buffers x block + f32 accumulator,
    # with 2x headroom; clamped to [16 MiB, 32 MiB] so it is legal on all of
    # v5e / v6e / v7x while keeping full double-buffering.
    block_bytes = tile_r * tile_c * in_bytes
    vmem_limit = int(min(32 * 1024 * 1024,
                         max(16 * 1024 * 1024,
                             2 * (2 * 2 * block_bytes + tile_r * tile_c * 4))))

    out = pl.pallas_call(
        _sample_loss_kernel,
        out_shape=jax.ShapeDtypeStruct((n_parallel * 8, 128), jnp.float32),
        grid=(n_parallel, n_steps),
        in_specs=[
            pl.BlockSpec((tile_r, tile_c), lambda p, i: (p * n_steps + i, 0)),
            pl.BlockSpec((tile_r, tile_c), lambda p, i: (p * n_steps + i, 0)),
            pl.BlockSpec(mu2d.shape, lambda p, i: (0, 0)),   # resident, fetched once
            pl.BlockSpec(lv2d.shape, lambda p, i: (0, 0)),   # resident, fetched once
        ],
        out_specs=pl.BlockSpec((8, 128), lambda p, i: (p, 0)),
        scratch_shapes=[pltpu.VMEM((tile_r, tile_c), jnp.float32)],
        compiler_params=pltpu.CompilerParams(
            dimension_semantics=("parallel", "arbitrary"),
            vmem_limit_bytes=vmem_limit),
        cost_estimate=cost,
    )(recon2d, x2d, mu2d, lv2d)

    # Each half wrote its partial at [p*8, 0] and zeros elsewhere.
    return jnp.sum(out)


def _reference(recon, x, mu, log_var):
    recon = recon.astype(jnp.float32)
    x = x.astype(jnp.float32)
    log_r = jnp.maximum(jnp.log(recon), -100.0)
    log_1mr = jnp.maximum(jnp.log(1.0 - recon), -100.0)
    bce = -jnp.sum(x * log_r + (1.0 - x) * log_1mr)
    mu = mu.astype(jnp.float32)
    log_var = log_var.astype(jnp.float32)
    kld = -0.5 * jnp.sum(1.0 + log_var - mu ** 2 - jnp.exp(log_var))
    return bce + kld


if __name__ == "__main__":
    key = jax.random.PRNGKey(0)
    k1, k2, k3, k4 = jax.random.split(key, 4)

    B, C, H, W = 2, 4, 16, 16
    latent = 32

    # recon must be a probability in (0, 1) for BCE; x is the target in [0, 1].
    recon = jax.nn.sigmoid(jax.random.normal(k1, (B, C, H, W), jnp.float32))
    x = jax.random.uniform(k2, (B, C, H, W), jnp.float32)
    mu = jax.random.normal(k3, (B, latent), jnp.float32)
    log_var = jax.random.normal(k4, (B, latent), jnp.float32) * 0.1

    loss = sample_loss(recon, x, mu, log_var)
    jax.block_until_ready(loss)
    ref = _reference(recon, x, mu, log_var)
    assert jnp.allclose(loss, ref, rtol=1e-5, atol=1e-2), (loss, ref)

    # Non-power-of-two spatial shape (exercises padding / multi-row path).
    recon_b = jax.nn.sigmoid(jax.random.normal(k1, (2, 3, 40, 40), jnp.float32))
    x_b = jax.random.uniform(k2, (2, 3, 40, 40), jnp.float32)
    loss_b = sample_loss(recon_b, x_b, mu, log_var)
    jax.block_until_ready(loss_b)
    ref_b = _reference(recon_b, x_b, mu, log_var)
    assert jnp.allclose(loss_b, ref_b, rtol=1e-5, atol=1e-2), (loss_b, ref_b)

    # bf16 inputs stay bf16 in HBM; the kernel casts per tile.
    recon_h = recon.astype(jnp.bfloat16)
    x_h = x.astype(jnp.bfloat16)
    loss_h = sample_loss(recon_h, x_h, mu, log_var)
    jax.block_until_ready(loss_h)
    ref_h = _reference(recon_h, x_h, mu, log_var)
    assert jnp.allclose(loss_h, ref_h, rtol=1e-4, atol=5e-2), (loss_h, ref_h)

    print("KERNEL_OK")
</pallas_src>

<mosaic_0001>
module attributes {stable_mosaic.version = 11 : i64} {
  func.func @_sample_loss_kernel(%arg0: i32, %arg1: i32, %arg2: memref<8x256xf32, #tpu.memory_space<vmem>>, %arg3: memref<8x256xf32, #tpu.memory_space<vmem>>, %arg4: memref<2x32xf32, #tpu.memory_space<vmem>>, %arg5: memref<2x32xf32, #tpu.memory_space<vmem>>, %arg6: memref<8x128xf32, #tpu.memory_space<vmem>>, %arg7: memref<8x256xf32, #tpu.memory_space<vmem>>) attributes {dimension_semantics = [#tpu.dimension_semantics<parallel>, #tpu.dimension_semantics<arbitrary>], iteration_bounds = array<i64: 2, 1>, scalar_prefetch = 0 : i64, scratch_operands = 1 : i64, tpu.core_type = #tpu.core_type<tc>, window_params = [{transform_indices = @transform_0, window_bounds = array<i64: 8, 256>}, {transform_indices = @transform_1, window_bounds = array<i64: 8, 256>}, {pipeline_mode = #tpu.pipeline_mode<synchronous>, transform_indices = @transform_2, window_bounds = array<i64: 2, 32>}, {pipeline_mode = #tpu.pipeline_mode<synchronous>, transform_indices = @transform_3, window_bounds = array<i64: 2, 32>}, {transform_indices = @transform_4, window_bounds = array<i64: 8, 128>}]} {
    %c0_i32 = arith.constant 0 : i32
    %0 = arith.cmpi eq, %arg1, %c0_i32 : i32
    %1 = arith.extui %0 : i1 to i32
    %c0_i32_0 = arith.constant 0 : i32
    %2 = arith.cmpi ne, %1, %c0_i32_0 : i32
    scf.if %2 {
      %cst_12 = arith.constant 0.000000e+00 : f32
      %22 = vector.broadcast %cst_12 : f32 to vector<8x256xf32>
      %c0_13 = arith.constant 0 : index
      %c0_14 = arith.constant 0 : index
      %23 = vector.load %arg7[%c0_13, %c0_14] : memref<8x256xf32, #tpu.memory_space<vmem>>, vector<8x256xf32>
      tpu.vector_store %arg7[%c0_13, %c0_14], %22 {strides = array<i32>} : memref<8x256xf32, #tpu.memory_space<vmem>>, vector<8x256xf32>,
    } else {
    }
    %c0 = arith.constant 0 : index
    %c0_1 = arith.constant 0 : index
    %3 = vector.load %arg2[%c0, %c0_1] : memref<8x256xf32, #tpu.memory_space<vmem>>, vector<8x256xf32>
    %c0_2 = arith.constant 0 : index
    %c0_3 = arith.constant 0 : index
    %4 = vector.load %arg3[%c0_2, %c0_3] : memref<8x256xf32, #tpu.memory_space<vmem>>, vector<8x256xf32>
    %5 = math.log %3 : vector<8x256xf32>
    %cst = arith.constant -1.000000e+02 : f32
    %6 = vector.broadcast %cst : f32 to vector<8x256xf32>
    %7 = arith.maximumf %5, %6 : vector<8x256xf32>
    %cst_4 = arith.constant 1.000000e+00 : f32
    %8 = vector.broadcast %cst_4 : f32 to vector<8x256xf32>
    %9 = arith.subf %8, %3 : vector<8x256xf32>
    %10 = math.log %9 : vector<8x256xf32>
    %cst_5 = arith.constant -1.000000e+02 : f32
    %11 = vector.broadcast %cst_5 : f32 to vector<8x256xf32>
    %12 = arith.maximumf %10, %11 : vector<8x256xf32>
    %c0_6 = arith.constant 0 : index
    %c0_7 = arith.constant 0 : index
    %13 = vector.load %arg7[%c0_6, %c0_7] : memref<8x256xf32, #tpu.memory_space<vmem>>, vector<8x256xf32>
    %14 = arith.subf %7, %12 : vector<8x256xf32>
    %15 = arith.mulf %4, %14 : vector<8x256xf32>
    %16 = arith.addf %12, %15 : vector<8x256xf32>
    %17 = arith.addf %13, %16 : vector<8x256xf32>
    %c0_8 = arith.constant 0 : index
    %c0_9 = arith.constant 0 : index
    %18 = vector.load %arg7[%c0_8, %c0_9] : memref<8x256xf32, #tpu.memory_space<vmem>>, vector<8x256xf32>
    tpu.vector_store %arg7[%c0_8, %c0_9], %17 {strides = array<i32>} : memref<8x256xf32, #tpu.memory_space<vmem>>, vector<8x256xf32>,
    %c0_i32_10 = arith.constant 0 : i32
    %19 = arith.cmpi eq, %arg1, %c0_i32_10 : i32
    %20 = arith.extui %19 : i1 to i32
    %c0_i32_11 = arith.constant 0 : i32
    %21 = arith.cmpi ne, %20, %c0_i32_11 : i32
    scf.if %21 {
      %c0_12 = arith.constant 0 : index
      %c0_13 = arith.constant 0 : index
      %22 = vector.load %arg4[%c0_12, %c0_13] : memref<2x32xf32, #tpu.memory_space<vmem>>, vector<2x32xf32>
      %c0_14 = arith.constant 0 : index
      %c0_15 = arith.constant 0 : index
      %23 = vector.load %arg5[%c0_14, %c0_15] : memref<2x32xf32, #tpu.memory_space<vmem>>, vector<2x32xf32>
      %cst_16 = arith.constant 1.000000e+00 : f32
      %24 = vector.broadcast %cst_16 : f32 to vector<2x32xf32>
      %25 = arith.addf %24, %23 : vector<2x32xf32>
      %26 = arith.mulf %22, %22 : vector<2x32xf32>
      %27 = arith.subf %25, %26 : vector<2x32xf32>
      %28 = math.exp %23 : vector<2x32xf32>
      %29 = arith.subf %27, %28 : vector<2x32xf32>
      %30 = vector.shape_cast %29 : vector<2x32xf32> to vector<1x2x32xf32>
      %cst_17 = arith.constant dense<0.000000e+00> : vector<1xf32>
      %31 = vector.multi_reduction <add>, %30, %cst_17 [1, 2] : vector<1x2x32xf32> to vector<1xf32>
      %32 = vector.shape_cast %31 : vector<1xf32> to vector<1x1x1xf32>
      %33 = vector.extract %32[0, 0, 0] : f32 from vector<1x1x1xf32>
      %cst_18 = arith.constant -5.000000e-01 : f32
      %34 = arith.mulf %cst_18, %33 : f32
      %c0_i32_19 = arith.constant 0 : i32
      %35 = arith.cmpi eq, %arg0, %c0_i32_19 : i32
      %36 = arith.extui %35 : i1 to i32
      %37 = arith.sitofp %36 : i32 to f32
      %38 = arith.mulf %34, %37 : f32
      %c0_20 = arith.constant 0 : index
      %c0_21 = arith.constant 0 : index
      %39 = vector.load %arg7[%c0_20, %c0_21] : memref<8x256xf32, #tpu.memory_space<vmem>>, vector<8x256xf32>
      %40 = vector.shape_cast %39 : vector<8x256xf32> to vector<1x8x256xf32>
      %cst_22 = arith.constant dense<0.000000e+00> : vector<1xf32>
      %41 = vector.multi_reduction <add>, %40, %cst_22 [1, 2] : vector<1x8x256xf32> to vector<1xf32>
      %42 = vector.shape_cast %41 : vector<1xf32> to vector<1x1x1xf32>
      %43 = vector.extract %42[0, 0, 0] : f32 from vector<1x1x1xf32>
      %44 = arith.subf %38, %43 : f32
      %45 = tpu.iota {dimensions = array<i32: 0>} : vector<8x128xi32>
      %46 = tpu.iota {dimensions = array<i32: 1>} : vector<8x128xi32>
      %c0_i32_23 = arith.constant 0 : i32
      %47 = vector.broadcast %c0_i32_23 : i32 to vector<8x128xi32>
      %48 = arith.cmpi eq, %45, %47 : vector<8x128xi32>
      %c0_i32_24 = arith.constant 0 : i32
      %49 = vector.broadcast %c0_i32_24 : i32 to vector<8x128xi32>
      %50 = arith.cmpi eq, %46, %49 : vector<8x128xi32>
      %51 = arith.andi %48, %50 : vector<8x128xi1>
      %cst_25 = arith.constant 0.000000e+00 : f32
      %52 = vector.broadcast %44 : f32 to vector<8x128xf32>
      %53 = vector.broadcast %cst_25 : f32 to vector<8x128xf32>
      %54 = arith.select %51, %52, %53 : vector<8x128xi1>, vector<8x128xf32>
      %c0_26 = arith.constant 0 : index
      %c0_27 = arith.constant 0 : index
      %55 = vector.load %arg6[%c0_26, %c0_27] : memref<8x128xf32, #tpu.memory_space<vmem>>, vector<8x128xf32>
      tpu.vector_store %arg6[%c0_26, %c0_27], %54 {strides = array<i32>} : memref<8x128xf32, #tpu.memory_space<vmem>>, vector<8x128xf32>,
    } else {
    }
    return
  }
  func.func @transform_0(%arg0: i32, %arg1: i32) -> (i32, i32) {
    %c1_i32 = arith.constant 1 : i32
    %0 = arith.muli %arg0, %c1_i32 : i32
    %1 = arith.addi %0, %arg1 : i32
    %c0_i32 = arith.constant 0 : i32
    %c0_i32_0 = arith.constant 0 : i32
    return %1, %c0_i32 : i32, i32
  }
  func.func @transform_1(%arg0: i32, %arg1: i32) -> (i32, i32) {
    %c1_i32 = arith.constant 1 : i32
    %0 = arith.muli %arg0, %c1_i32 : i32
    %1 = arith.addi %0, %arg1 : i32
    %c0_i32 = arith.constant 0 : i32
    %c0_i32_0 = arith.constant 0 : i32
    return %1, %c0_i32 : i32, i32
  }
  func.func @transform_2(%arg0: i32, %arg1: i32) -> (i32, i32) {
    %c0_i32 = arith.constant 0 : i32
    %c0_i32_0 = arith.constant 0 : i32
    %c0_i32_1 = arith.constant 0 : i32
    return %c0_i32, %c0_i32_0 : i32, i32
  }
  func.func @transform_3(%arg0: i32, %arg1: i32) -> (i32, i32) {
    %c0_i32 = arith.constant 0 : i32
    %c0_i32_0 = arith.constant 0 : i32
    %c0_i32_1 = arith.constant 0 : i32
    return %c0_i32, %c0_i32_0 : i32, i32
  }
  func.func @transform_4(%arg0: i32, %arg1: i32) -> (i32, i32) {
    %c0_i32 = arith.constant 0 : i32
    %c0_i32_0 = arith.constant 0 : i32
    return %arg0, %c0_i32 : i32, i32
  }
}

</mosaic_0001>

<bundles_post_ra>
// kernel: tpu_custom_call.1
= control target key start
LH: loop header
LB: loop body
LE: loop exit
PB: predicated region body
PF: predicated region fallthrough
CT: control target
= control target key end

     0   :  { %s989_s0 = inlined_call_operand.hbm [shape: f32[16,256], index: 0, kind: input, shape index: {}]   ;;  %s990_s1 = inlined_call_operand.hbm [shape: f32[16,256], index: 1, kind: input, shape index: {}]   ;;  %s991_s2 = inlined_call_operand.hbm [shape: f32[2,32], index: 2, kind: input, shape index: {}]   ;;  %s992_s3 = inlined_call_operand.vmem [shape: f32[2,32], index: 3, kind: input, shape index: {}]   ;;  %s993_s4 = inlined_call_operand.hbm [shape: f32[16,128], index: 4, kind: output, shape index: {}]  }
   0x1   :  { %997 = sst [smem:[#allocation18_spill]] %s991_s2 }
   0x2   :  { %9 = vsyncpa [#allocation4], 0 }
   0x3   :  { %11 = vsyncpa [#allocation4 + $0x1], 0 }
   0x4   :  { %12 = vsyncpa [#allocation7], 0 }
   0x5   :  { %14 = vsyncpa [#allocation7 + $0x1], 0 }
   0x6   :  { %15 = vsyncpa [#allocation5], 0 }
   0x7   :  { %17 = vsyncpa [#allocation5 + $0x1], 0  ;;  %s826_s15 = smov 0   ;;  %s828_s16 = smov 0  }
   0x8   :  { %s830_s17 = smov 0   ;;  %s832_s18 = smov 0  }
   0x9   :  { %s834_s19 = smov 0   ;;  %s836_s20 = smov 0  }
   0xa LB: > { %998 = sst [smem:[#allocation14_spill]] %s794_s19  ;;  %s857_s21 = sadd.s32 4294967295, %s798_s20   ;;  %s798_s20 = sphi %s836_s20, %s23_s20   ;;  %s794_s19 = sphi %s834_s19, %s1011_s19   ;;  %s790_s18 = sphi %s832_s18, %s1010_s18   ;;  %s786_s17 = sphi %s830_s17, %s1014_s17   ;;  %s782_s16 = sphi %s828_s16, %s1013_s16   ;;  %s778_s15 = sphi %s826_s15, %s1012_s15  }
   0xb   : > { %s505_s22 = sadd.s32 4294967294, %s798_s20   ;;  %p57_p0 = scmp.ne.s32.totalorder %s782_s16, %s778_s15 }
   0xc   : > { %p58_p1 = scmp.eq.s32.totalorder %s857_s21, 0  ;;  %p151_p2 = scmp.eq.s32.totalorder %s857_s21, 1 }
   0xd   : > { %p157_p3 = scmp.eq.s32.totalorder %s505_s22, 1  ;;  %p506_p5 = scmp.ge.s32.totalorder %s798_s20, 1 }
   0xe   : > { %p866_p4 = por %p58_p1, %p57_p0  ;;  %p164_p7 = scmp.lt.s32.totalorder %s798_s20, 3 }
   0xf   : > { %p871_p6 = por %p157_p3, %p57_p0  ;;  %s1002_s2 = sld [smem:[#allocation18_spill]] }
  0x10   : > { %p879_p8 = pnand %p506_p5, %p164_p7  ;;  %p508_p9 = scmp.ge.s32.totalorder %s798_s20, 2 }
  0x11   : > { %s1000_s24 = scalar_select %p871_p6, 1, 0 }
  0x12   : > { %p540_p10 = pneg %p879_p8  ;;  %s800_s29 = smov [#allocation8]  }
  0x13   : > { %1001 = sst [smem:[#allocation15_spill]] %s1000_s24  ;;  %s178_s30 = sshll.u32 %s800_s29, 4  ;;  %s179_s30 = int_to_ptr.vmem [resolvable:$true] %s178_s30 }
  0x14   : > { %p541_p11 = pnand %p540_p10, %p58_p1  ;;  %s35_s5 = sadd.s32 1, %s794_s19 }
  0x15   : > { %s176_s27 = sshll.u32 %s1002_s2, 4  ;;  %p37_p12 = scmp.ge.s32.totalorder %s35_s5, 2  ;;  %s177_s27 = int_to_ptr.hbm [resolvable:$true] %s176_s27 }
  0x16   : > { %543 = dma.hbm_to_vmem [thread:$0]  (!%p541_p11), %s177_s27, 32, %s179_s30, [#allocation7]  }
  0x17   : > { %s44_s6 = sadd.s32 1, %s786_s17  ;;  %p51_p13 = scmp.ne.s32.totalorder %s786_s17, %s782_s16 }
  0x18   : > { %p52_p0 = scmp.eq.s32.totalorder %s798_s20, 0  ;;  %s1016_s5 = smov (%p37_p12, %s35_s5), 0 }
  0x19   : > { %1004 = sst [smem:[#allocation16_spill]] %s1016_s5  ;;  %p901_p5 = por %p151_p2, %p51_p13 }
  0x1a   : > { %p895_p3 = por %p52_p0, %p51_p13  ;;  %s41_s9 = ssub.s32 %s794_s19, %s1016_s5 }
  0x1b   : > { %p556_p7 = scmp.lt.s32.totalorder %s798_s20, 2  ;;  %p42_p10 = scmp.eq.s32.totalorder %s41_s9, 0 }
  0x1c   : > { %s192_s10 = sand.u32 1, %s786_s17   ;;  %s524_s13 = sshll.u32 %s794_s19, 4 }
  0x1d   : > { %s509_s11 = sshll.u32 %s192_s10, 4  ;;  %s202_s25 = scalar_lea.hbm %s989_s0, %s524_s13 }
  0x1e   : > { %s910_s12 = scalar_select %p42_p10, %s786_s17, %s44_s6  }
  0x1f   : > { %s196_s26 = scalar_lea.vmem [#allocation3], %s509_s11  ;;  %s204_s29 = sshll.u32 %s202_s25, 4  ;;  %s205_s29 = int_to_ptr.hbm [resolvable:$true] %s204_s29 }
  0x20   : > { %1007 = sst [smem:[#allocation17_spill]] %s910_s12  ;;  %s206_s27 = sshll.u32 %s196_s26, 4  ;;  %s207_s27 = int_to_ptr.vmem [resolvable:$true] %s206_s27 }
  0x21   : > { %p545_p2 = pnand %p556_p7, %p895_p3  ;;  %s223_s9 = scalar_lea.hbm %s990_s1, %s524_s13 }
  0x22   : > { %s213_s5 = sand.u32 1, %s798_s20   ;;  %s193_s24 = scalar_lea.sflag [#allocation4], %s192_s10 }
  0x23   : > { %547 = dma.hbm_to_vmem [thread:$0]  (!%p545_p2), %s205_s29, 256, %s207_s27, %s193_s24  }
  0x24   : > { %s225_s6 = sshll.u32 %s223_s9, 4  ;;  %s217_s19 = scalar_lea.vmem [#allocation6], %s509_s11  ;;  %s226_s6 = int_to_ptr.hbm [resolvable:$true] %s225_s6 }
  0x25   : > { %s227_s12 = sshll.u32 %s217_s19, 4  ;;  %s214_s14 = scalar_lea.sflag [#allocation7], %s213_s5  ;;  %s228_s12 = int_to_ptr.vmem [resolvable:$true] %s227_s12 }
  0x26   : > { %550 = dma.hbm_to_vmem [thread:$0]  (!%p545_p2), %s226_s6, 256, %s228_s12, %s214_s14  }
  0x27   : > { %236 = sbr.rel (%p879_p8) target bundleno = 261 (0x105), region = 36  ;;  %s925_s7 = sand.u32 (!%p879_p8), 1, %s782_s16  }
  0x28   : > { %s516_s2 = sshll.u32 (!%p879_p8), %s925_s7, 4  ;;  %s239_s13 = scalar_lea.sflag (!%p879_p8), [#allocation4], %s925_s7 }
  0x29   : > { %s242_s10 = scalar_lea.vmem (!%p879_p8), [#allocation3], %s516_s2 }
  0x2c   : > { %761 = dma.done.wait (%p866_p4), %s239_s13, 256  }
  0x2d   : > { %763 = vsyncadd (%p866_p4), %s239_s13, 4294967040  ;;  %s248_s19 = sand.u32 1, %s857_s21   ;;  %s934_s28 = scalar_lea.vmem [#allocation6], %s516_s2 }
  0x2e   : > { %s249_s24 = scalar_lea.sflag [#allocation7], %s248_s19 }
  0x2f   : > { %765 = dma.done.wait (%p866_p4), %s249_s24, 256  }
  0x30   : > { %767 = vsyncadd (%p866_p4), %s249_s24, 4294967040 }
  0x31   : > { %769 = dma.done.wait (%p58_p1), [#allocation7], 32  }
  0x32   : > { %771 = vsyncadd (%p58_p1), [#allocation7], 4294967264  ;;  %v329_v0 = vld [vmem:[#allocation8] sm:$0x3]  ;;  %v297_v5 = vld [vmem:[%s242_s10 + $0x8] sm:$0xff]  ;;  %vm337_vm0 = vcmask 254976   ;;  %v366_v48 = vlaneseq }
  0x33   : > { %v330_v1 = vld [vmem:[%s992_s3] sm:$0x3]  ;;  %v332_v6 = vmul.f32 %v329_v0, %v329_v0  ;;  %v307_v8 = vsub.f32 1.0, %v297_v5  ;;  %v299_v26 = vld [vmem:[%s934_s28 + $0x8] sm:$0xff]  ;;  %p349_p1 = scmp.eq.s32.totalorder %s790_s18, 0  ;;  %s519_s12 = sshll.u32 %s925_s7, 3 }
  0x34   : > { %v296_v2 = vld [vmem:[%s242_s10] sm:$0xff]  ;;  %v331_v3 = vadd.f32 1.0, %v330_v1  ;;  %v334_v4 = vmul.f32 1.442695, %v330_v1  ;;  %v367_v49 = vshrl.u32 %v366_v48, 7  ;;  %v369_v50 = vand.u32 127, %v366_v48 }
  0x35   : > { %608 = vlog2.f32 %v296_v2  ;;  %v306_v7 = vsub.f32 1.0, %v296_v2  ;;  %v298_v24 = vld [vmem:[%s934_s28] sm:$0xff]  ;;  %s350_s21 = scalar_select %p349_p1, 1, 0 }
  0x36   : > { %610 = vlog2.f32 %v297_v5  ;;  %v333_v9 = vsub.f32 %v331_v3, %v332_v6  ;;  %s521_s22 = sshll.u32 %s790_s18, 3  ;;  %vm370_vm1 = vcmp.eq.s32.totalorder %v367_v49, 0  ;;  %vm371_vm2 = vcmp.eq.s32.totalorder %v369_v50, 0  ;;  %s287_s6 = scalar_lea.vmem [#allocation9], %s519_s12 }
  0x37   : > { %612 = vpow2.f32 %v334_v4  ;;  %s351_s26 = scvt.s32.f32 %s350_s21  ;;  %s387_s30 = scalar_lea.hbm %s993_s4, %s521_s22  ;;  %vm372_vm3 = vmand %vm370_vm1, %vm371_vm2 }
  0x38   : > { %614 = vlog2.f32 %v306_v7  ;;  %s389_s14 = sshll.u32 %s287_s6, 4  ;;  %s391_s13 = sshll.u32 %s387_s30, 4  ;;  %s390_s14 = int_to_ptr.vmem [resolvable:$true] %s389_s14  ;;  %s392_s13 = int_to_ptr.hbm [resolvable:$true] %s391_s13 }
  0x39   : > { %616 = vlog2.f32 %v307_v8  ;;  %s377_s18 = scalar_lea.sflag [#allocation5], %s925_s7  ;;  %s722_s19 = sshra.s32 %s392_s13, 4  ;;  %s723_s19 = int_to_ptr.hbm [resolvable:$true] %s722_s19 }
  0x3a   : > { %s724_s24 = scalar_lea.hbm %s723_s19, 8  ;;  %s728_s11 = scalar_lea.hbm %s993_s4, 16 }
  0x3b   : > { %v609_v10 = vpop.eup %608  ;;  %p725_p4 = scmp.ne.s32.totalorder %s723_s19, %s724_s24  ;;  %p729_p12 = scmp.lt.s32.totalorder %s723_s19, %s993_s4 }
  0x3c   : > { %v611_v11 = vpop.eup %610  ;;  %v301_v12 = vmul.f32 0.6931472, %v609_v10  ;;  %p730_p13 = scmp.lt.s32.totalorder %s728_s11, %s724_s24 }
  0x3d   : > { %v613_v13 = vpop.eup %612  ;;  %v303_v14 = vmul.f32 0.6931472, %v611_v11  ;;  %p726_p8 = pnand %p725_p4, %p901_p5 }
  0x3e   : > { %v615_v15 = vpop.eup %614  ;;  %v336_v16 = vsub.f32 %v333_v9, %v613_v13  ;;  %v304_v18 = vmax.f32 %v301_v12, -100.0  ;;  %p731_p0 = por %p730_p13, %p729_p12 }
  0x3f   : > { %v617_v17 = vpop.eup %616  ;;  %v309_v19 = vmul.f32 0.6931472, %v615_v15  ;;  %v305_v21 = vmax.f32 %v303_v14, -100.0  ;;  %p727_p11 = pneg %p726_p8 }
  0x40   : > { %v338_v20 = vsel %vm337_vm0, %v336_v16, 0.0  ;;  %v311_v22 = vmul.f32 0.6931472, %v617_v17 }
  0x41   : > { %339 = vadd.xlane.f32.xlu0 %v338_v20  ;;  %v312_v23 = vmax.f32 %v309_v19, -100.0  ;;  %p732_p3 = pnand %p731_p0, %p727_p11 }
  0x42   : > { %v313_v25 = vmax.f32 %v311_v22, -100.0 }
  0x43   : > { %v316_v27 = vsub.f32 %v304_v18, %v312_v23 }
  0x44   : > { %v317_v28 = vsub.f32 %v305_v21, %v313_v25 }
  0x45   : > { %v318_v29 = vmul.f32 %v316_v27, %v298_v24 }
  0x46   : > { %v319_v30 = vmul.f32 %v317_v28, %v299_v26 }
  0x47   : > { %v320_v31 = vadd.f32 %v318_v29, %v312_v23 }
  0x48   : > { %v321_v32 = vadd.f32 %v319_v30, %v313_v25 }
  0x4a   : > { %v355_v33 = vadd.f32 %v321_v32, %v320_v31 }
  0x4c   : > { %356 = vadd.xlane.f32.xlu0 %v355_v33 }
  0xb4   : > { %v340_v34 = vpop.xlane.xlu0 %339 }
  0xb5   : > { %v341_v35 = vrot.slane %v340_v34, 4 }
  0xb7   : > { %v342_v36 = vadd.f32 %v341_v35, %v340_v34 }
  0xb9   : > { %v343_v37 = vrot.slane %v342_v36, 2 }
  0xbb   : > { %v344_v38 = vadd.f32 %v343_v37, %v342_v36 }
  0xbd   : > { %v345_v39 = vrot.slane %v344_v38, 1 }
  0xbf   : > { %v357_v40 = vpop.xlane.xlu0 %356  ;;  %v346_v41 = vadd.f32 %v345_v39, %v344_v38 }
  0xc0   : > { %v358_v42 = vrot.slane %v357_v40, 4 }
  0xc1   : > { %526 = vpush %v346_v41 }
  0xc2   : > { %v359_v43 = vadd.f32 %v358_v42, %v357_v40 }
  0xc4   : > { %v360_v44 = vrot.slane %v359_v43, 2 }
  0xc6   : > { %v361_v45 = vadd.f32 %v360_v44, %v359_v43 }
  0xc8   : > { %v362_v46 = vrot.slane %v361_v45, 1 }
  0xca   : > { %v363_v47 = vadd.f32 %v362_v46, %v361_v45 }
  0xcc   : > { %528 = vpush %v363_v47 }
  0xf2   : > { %s527_s23 = spop %526 }
  0xf3   : > { %s348_s25 = smul.f32 -0.5, %s527_s23 }
  0xf5   : > { %s352_s9 = smul.f32 %s351_s26, %s348_s25 }
  0xfd   : > { %s529_s2 = spop %528 }
  0xfe   : > { %s365_s10 = ssub.f32 %s352_s9, %s529_s2 }
 0x100   : > { %v373_v51 = vstv %s365_s10 }
 0x101   : > { %v374_v52 = vsel %vm372_vm3, %v373_v51, 0.0 }
 0x102   : > { %375 = vst [vmem:[%s287_s6] sm:$0xff] %v374_v52 }
 0x103   : > { %735 = shalt.err (!%p732_p3)
}
 0x104   : > { %538 = dma.vmem_to_hbm [thread:$0]  (%p901_p5), %s390_s14, 128, %s392_s13, %s377_s18  }
 0x105 PF: > { %s403_s12 = sand.u32 1, %s778_s15   ;;  %p552_p7 = pnand %p508_p9, %p871_p6 }
 0x106   : > { %s404_s22 = scalar_lea.sflag [#allocation5], %s403_s12 }
 0x107   : > { %p553_p10 = pneg %p552_p7 }
 0x109   : > { %773 = dma.done.wait (%p553_p10), %s404_s22, 128  }
 0x10a   : > { %775 = vsyncadd (%p553_p10), %s404_s22, 4294967168  ;;  %s23_s20 = sadd.s32 1, %s798_s20   ;;  %s1009_s25 = sld [smem:[#allocation17_spill]] }
 0x10b   : > { %p20_p2 = scmp.ge.s32.totalorder %s23_s20, 4   ;;  %s1010_s18 = sld [smem:[#allocation14_spill]] }
 0x10c   : > { %s1011_s19 = sld [smem:[#allocation16_spill]]  ;;  %s1012_s15 = smov %s782_s16 }
 0x10d   : > { %s1013_s16 = smov %s786_s17  ;;  %22 = sbr.rel (!%p20_p2) target bundleno = 10 (0xa), region = 106 }
 0x110   : > { %s1014_s17 = smov %s1009_s25 }
 0x112   :  { %410 = vsyncpa [#allocation4], 1 }
 0x113   :  { %412 = vsyncpa [#allocation4 + $0x1], 1 }
 0x114   :  { %413 = vsyncpa [#allocation7], 1 }
 0x115   :  { %415 = vsyncpa [#allocation7 + $0x1], 1 }
 0x116   :  { %416 = vsyncpa [#allocation5], 1 }
 0x117   :  { %418 = vsyncpa [#allocation5 + $0x1], 1 }

</bundles_post_ra>
